<compile_context>
chip_gen: v7x
topology: tpu7x:2x2x1
jax: 0.10.0
libtpu: 0.0.40
codegen_flags: <defaults>
</compile_context>

<pallas_src>
import functools

import jax
import jax.numpy as jnp
from jax.experimental import pallas as pl
from jax.experimental.pallas import tpu as pltpu


_FALLBACK_VMEM_BYTES = 64 * 1024 * 1024    # v7x per-TC physical: safe lower bound
_VMEM_HEADROOM = 16 * 1024 * 1024


def _cdiv(a, b):
    return (a + b - 1) // b


def _round_up(x, m):
    return ((x + m - 1) // m) * m


def _vmem_budget_bytes():
    """(tile budget, vmem_limit_bytes) derived from the actual chip, with fallback."""
    try:
        cap = int(pltpu.get_tpu_info().vmem_capacity_bytes)
    except Exception:
        cap = _FALLBACK_VMEM_BYTES
    budget = max(cap - _VMEM_HEADROOM, 8 * 1024 * 1024)
    limit = max(min(cap - (8 << 20), 128 << 20), 32 << 20)
    return budget, limit


def _pick_tile(dim, unit, cap):
    """A tile that is a multiple of `unit`, about <= cap, minimizing edge padding."""
    if dim <= cap:
        return _round_up(dim, unit)
    ntiles = _cdiv(dim, cap)
    return _round_up(_cdiv(dim, ntiles), unit)


def _select_tiles(M, K, N, in_itemsize, budget):
    """Pick (tm, tn, tk).  tk == K means the fused full-K kernel is used."""
    sub = max(8, 32 // in_itemsize)          # sublane unit: 8 f32, 16 bf16, 32 int8/fp8
    tm = _pick_tile(M, sub, 256)
    tn = _pick_tile(N, 128, 512)

    def fused_ws(tm_, tn_):
        # double-buffered x / W / bias input tiles + double-buffered output tile
        return 2 * (tm_ * K + K * tn_ + tn_) * in_itemsize + 2 * tm_ * tn_ * 4

    while fused_ws(tm, tn) > budget and tn > 128:
        tn -= 128
    while fused_ws(tm, tn) > budget and tm > sub:
        tm = max(sub, ((tm // 2) // sub) * sub)
    if fused_ws(tm, tn) <= budget:
        return tm, tn, K                      # fused full-K path

    # Full K does not fit even at the smallest tile: add a K reduction axis.
    tk = _pick_tile(K, 128, 2048)

    def ktiled_ws(tm_, tn_, tk_):
        return (2 * (tm_ * tk_ + tk_ * tn_ + tn_) * in_itemsize
                + 2 * tm_ * tn_ * 4           # output tile (double-buffered)
                + tm_ * tn_ * 4)              # f32 accumulator scratch

    while ktiled_ws(tm, tn, tk) > budget and tk > 128:
        tk = max(128, ((tk // 2) // 128) * 128)
    while ktiled_ws(tm, tn, tk) > budget and tn > 128:
        tn -= 128
    while ktiled_ws(tm, tn, tk) > budget and tm > sub:
        tm = max(sub, ((tm // 2) // sub) * sub)
    return tm, tn, tk


def _fused_kernel(x_ref, w_ref, b_ref, o_ref, *, precision=None):
    """o = relu(x @ w + b); full K resident per grid step (no accumulator)."""
    acc = jnp.dot(x_ref[...], w_ref[...],
                  preferred_element_type=jnp.float32, precision=precision)
    o_ref[...] = jnp.maximum(acc + b_ref[...].astype(jnp.float32), 0.0).astype(o_ref.dtype)


def _ktiled_kernel(x_ref, w_ref, b_ref, o_ref, acc_ref, *, precision=None):
    """K-tiled fallback: f32 accumulator, pl.when init / epilogue."""
    @pl.when(pl.program_id(2) == 0)
    def _():
        acc_ref[...] = jnp.zeros_like(acc_ref)

    acc_ref[...] += jnp.dot(x_ref[...], w_ref[...],
                            preferred_element_type=jnp.float32, precision=precision)

    @pl.when(pl.program_id(2) == pl.num_programs(2) - 1)
    def _():
        o_ref[...] = jnp.maximum(acc_ref[...] + b_ref[...].astype(jnp.float32),
                                 0.0).astype(o_ref.dtype)


@functools.partial(jax.jit,
                   static_argnames=("compute_dtype", "precision", "tm", "tn", "tk"))
def img_nn_forward(x, w, b, *, compute_dtype=None, precision=None,
                   tm=None, tn=None, tk=None):
    """relu(x @ w + b).  x: (M, K), w: (K, N) (PyTorch weight transposed), b: (1, N)."""
    M, K = x.shape
    K2, N = w.shape
    assert K == K2 and b.shape == (1, N)
    out_dtype = x.dtype

    if compute_dtype is not None:
        x = x.astype(compute_dtype)
        w = w.astype(compute_dtype)
    in_itemsize = jnp.dtype(x.dtype).itemsize

    budget, vmem_limit = _vmem_budget_bytes()
    atm, atn, atk = _select_tiles(M, K, N, in_itemsize, budget)
    tm = atm if tm is None else tm
    tn = atn if tn is None else tn
    tk = atk if tk is None else tk

    # Zero-pad to tile multiples (lane-dense stores, no (8,128) violations);
    # padded rows/cols are sliced off the result below.
    Mp, Np = _round_up(M, tm), _round_up(N, tn)
    Kp = K if tk == K else _round_up(K, tk)
    if (Mp, Kp) != (M, K):
        x = jnp.pad(x, ((0, Mp - M), (0, Kp - K)))
    if (Kp, Np) != (K, N):
        w = jnp.pad(w, ((0, Kp - K), (0, Np - N)))
    if Np != N:
        b = jnp.pad(b, ((0, 0), (0, Np - N)))

    cost = pl.CostEstimate(
        flops=2 * Mp * Kp * Np,
        transcendentals=0,
        bytes_accessed=(in_itemsize * (Mp * Kp + Kp * Np)
                        + jnp.dtype(b.dtype).itemsize * Np
                        + jnp.dtype(out_dtype).itemsize * Mp * Np),
    )
    cparams = pltpu.CompilerParams(
        dimension_semantics=(("parallel", "parallel") if tk == Kp
                             else ("parallel", "parallel", "arbitrary")),
        vmem_limit_bytes=vmem_limit,
    )

    if tk == Kp:
        # Fused full-K kernel.  Grid = (col tiles, row tiles): the weight/bias
        # block index depends only on the OUTER axis, so it stays resident
        # across the inner row loop (weight streamed from HBM exactly once).
        grid = (Np // tn, Mp // tm)
        out = pl.pallas_call(
            functools.partial(_fused_kernel, precision=precision),
            out_shape=jax.ShapeDtypeStruct((Mp, Np), out_dtype),
            grid=grid,
            in_specs=[
                pl.BlockSpec((tm, Kp), lambda j, i: (i, 0)),   # x row tile, full K
                pl.BlockSpec((Kp, tn), lambda j, i: (0, j)),   # W col tile (stationary)
                pl.BlockSpec((1, tn), lambda j, i: (0, j)),    # bias col tile
            ],
            out_specs=pl.BlockSpec((tm, tn), lambda j, i: (i, j)),
            compiler_params=cparams,
            cost_estimate=cost,
        )(x, w, b)
    else:
        # K reduction axis (innermost, "arbitrary") with resident f32 accumulator.
        grid = (Np // tn, Mp // tm, Kp // tk)
        out = pl.pallas_call(
            functools.partial(_ktiled_kernel, precision=precision),
            out_shape=jax.ShapeDtypeStruct((Mp, Np), out_dtype),
            grid=grid,
            in_specs=[
                pl.BlockSpec((tm, tk), lambda j, i, k: (i, k)),
                pl.BlockSpec((tk, tn), lambda j, i, k: (k, j)),
                pl.BlockSpec((1, tn), lambda j, i, k: (0, j)),
            ],
            out_specs=pl.BlockSpec((tm, tn), lambda j, i, k: (i, j)),
            scratch_shapes=[pltpu.VMEM((tm, tn), jnp.float32)],
            compiler_params=cparams,
            cost_estimate=cost,
        )(x, w, b)

    return out[:M, :N]


def img_nn_reference(x, w, b):
    """Pure-JAX reference of the PyTorch forward."""
    return jnp.maximum(x @ w + b, 0.0)


if __name__ == "__main__":
    # Small shapes consistent with the module (a Linear on flattened image
    # features): batch=8, input_dim=512, output_dim=256.
    batch, input_dim, output_dim = 8, 512, 256

    key = jax.random.PRNGKey(0)
    kx, kw, kb = jax.random.split(key, 3)

    x = jax.random.normal(kx, (batch, input_dim), dtype=jnp.float32)

    # Deterministic "nn.Linear"-style init (uniform in +/- 1/sqrt(in_features)).
    bound = 1.0 / jnp.sqrt(jnp.float32(input_dim))
    # PyTorch weight is (out, in); store transposed (in, out) for the kernel.
    w = jax.random.uniform(
        kw, (input_dim, output_dim), dtype=jnp.float32, minval=-bound, maxval=bound
    )
    b = jax.random.uniform(
        kb, (1, output_dim), dtype=jnp.float32, minval=-bound, maxval=bound
    )

    ref = img_nn_reference(x, w, b)

    # f32 path (default): strict check against the pure-JAX reference.
    out = jax.block_until_ready(img_nn_forward(x, w, b))
    assert out.shape == (batch, output_dim)
    assert jnp.allclose(out, ref, atol=1e-5, rtol=1e-5), "f32 mismatch vs reference"

    # bf16 compute path (v6e/v7x MXU + halved HBM bytes); f32 epilogue, f32 output.
    out_bf16 = jax.block_until_ready(
        img_nn_forward(x, w, b, compute_dtype=jnp.bfloat16)
    )
    assert out_bf16.shape == (batch, output_dim)
    assert out_bf16.dtype == ref.dtype
    assert jnp.allclose(out_bf16, ref, atol=1e-1, rtol=5e-2), "bf16 mismatch vs reference"

    print("KERNEL_OK")
</pallas_src>

<mosaic_0001>
module attributes {stable_mosaic.version = 11 : i64} {
  func.func @_fused_kernel(%arg0: i32, %arg1: i32, %arg2: memref<8x512xf32, #tpu.memory_space<vmem>>, %arg3: memref<512x256xf32, #tpu.memory_space<vmem>>, %arg4: memref<1x256xf32, #tpu.memory_space<vmem>>, %arg5: memref<8x256xf32, #tpu.memory_space<vmem>>) attributes {dimension_semantics = [#tpu.dimension_semantics<parallel>, #tpu.dimension_semantics<parallel>], iteration_bounds = array<i64: 1, 1>, scalar_prefetch = 0 : i64, scratch_operands = 0 : i64, tpu.core_type = #tpu.core_type<tc>, window_params = [{transform_indices = @transform_0, window_bounds = array<i64: 8, 512>}, {transform_indices = @transform_1, window_bounds = array<i64: 512, 256>}, {transform_indices = @transform_2, window_bounds = array<i64: 1, 256>}, {transform_indices = @transform_3, window_bounds = array<i64: 8, 256>}]} {
    %c0 = arith.constant 0 : index
    %c0_0 = arith.constant 0 : index
    %0 = vector.load %arg2[%c0, %c0_0] : memref<8x512xf32, #tpu.memory_space<vmem>>, vector<8x512xf32>
    %c0_1 = arith.constant 0 : index
    %c0_2 = arith.constant 0 : index
    %1 = vector.load %arg3[%c0_1, %c0_2] : memref<512x256xf32, #tpu.memory_space<vmem>>, vector<512x256xf32>
    %cst = arith.constant dense<0.000000e+00> : vector<8x256xf32>
    %2 = tpu.matmul %0, %1, %cst {dimension_numbers = #tpu.dot_dimension_numbers<[1], [0], [0], [1], [0, 0, 1, 1], [], []>} : vector<8x512xf32>, vector<512x256xf32>, vector<8x256xf32> -> vector<8x256xf32>
    %c0_3 = arith.constant 0 : index
    %c0_4 = arith.constant 0 : index
    %3 = vector.load %arg4[%c0_3, %c0_4] : memref<1x256xf32, #tpu.memory_space<vmem>>, vector<1x256xf32>
    %4 = vector.broadcast %3 : vector<1x256xf32> to vector<8x256xf32>
    %5 = arith.addf %2, %4 : vector<8x256xf32>
    %cst_5 = arith.constant 0.000000e+00 : f32
    %6 = vector.broadcast %cst_5 : f32 to vector<8x256xf32>
    %7 = arith.maximumf %5, %6 : vector<8x256xf32>
    %c0_6 = arith.constant 0 : index
    %c0_7 = arith.constant 0 : index
    %8 = vector.load %arg5[%c0_6, %c0_7] : memref<8x256xf32, #tpu.memory_space<vmem>>, vector<8x256xf32>
    tpu.vector_store %arg5[%c0_6, %c0_7], %7 {strides = array<i32>} : memref<8x256xf32, #tpu.memory_space<vmem>>, vector<8x256xf32>,
    return
  }
  func.func @transform_0(%arg0: i32, %arg1: i32) -> (i32, i32) {
    %c0_i32 = arith.constant 0 : i32
    %c0_i32_0 = arith.constant 0 : i32
    return %arg1, %c0_i32 : i32, i32
  }
  func.func @transform_1(%arg0: i32, %arg1: i32) -> (i32, i32) {
    %c0_i32 = arith.constant 0 : i32
    %c0_i32_0 = arith.constant 0 : i32
    return %c0_i32, %arg0 : i32, i32
  }
  func.func @transform_2(%arg0: i32, %arg1: i32) -> (i32, i32) {
    %c0_i32 = arith.constant 0 : i32
    %c0_i32_0 = arith.constant 0 : i32
    return %c0_i32, %arg0 : i32, i32
  }
  func.func @transform_3(%arg0: i32, %arg1: i32) -> (i32, i32) {
    %c0_i32 = arith.constant 0 : i32
    return %arg1, %arg0 : i32, i32
  }
}

</mosaic_0001>

<bundles_post_ra>
// kernel: img_nn_forward.1
= control target key start
LH: loop header
LB: loop body
LE: loop exit
PB: predicated region body
PF: predicated region fallthrough
CT: control target
= control target key end

     0   :  { %8 = vsyncpa [#allocation3], 0  ;;  %s627_s0 = inlined_call_operand.hbm [shape: f32[8,512], index: 0, kind: input, shape index: {}]   ;;  %s628_s1 = inlined_call_operand.hbm [shape: f32[512,256], index: 1, kind: input, shape index: {}]   ;;  %s629_s2 = inlined_call_operand.vmem [shape: f32[1,256], index: 2, kind: input, shape index: {}]   ;;  %s630_s3 = inlined_call_operand.hbm [shape: f32[8,256], index: 3, kind: output, shape index: {}]  }
   0x1   :  { %9 = vsyncpa [#allocation6], 0 }
   0x2   :  { %10 = vsyncpa [#allocation4], 0  ;;  %s556_s12 = smov [#allocation2]   ;;  %s557_s14 = smov [#allocation5]  }
   0x3   :  { %s17_s13 = sshll.u32 %s556_s12, 4  ;;  %s26_s15 = sshll.u32 %s557_s14, 4  ;;  %s18_s13 = int_to_ptr.vmem [resolvable:$true] %s17_s13  ;;  %s581_s15 = int_to_ptr.vmem [resolvable:$true] %s26_s15 }
   0x4   :  { %s484_s18 = scalar_lea.hbm %s627_s0, 512 }
   0x5   :  { %p485_p0 = scmp.ne.s32.totalorder %s627_s0, %s484_s18  ;;  %p488_p1 = scmp.lt.u32.totalorder %s484_s18, %s627_s0 }
   0x7   :  { %p490_p2 = pnand %p488_p1, %p485_p0 }
   0x9   :  { %493 = shalt.err (!%p490_p2)
}
   0xa   :  { %s494_s23 = scalar_lea.vmem %s18_s13, 512  ;;  %p499_p4 = scmp.lt.s32.totalorder %s18_s13, %s18_s13 }
   0xb   :  { %p495_p3 = scmp.ne.s32.totalorder %s18_s13, %s494_s23  ;;  %p500_p5 = scmp.lt.s32.totalorder %s494_s23, %s494_s23 }
   0xd   :  { %p501_p6 = por %p500_p5, %p499_p4 }
   0xf   :  { %p502_p7 = pnand %p501_p6, %p495_p3 }
  0x11   :  { %505 = shalt.err (!%p502_p7)
}
  0x12   :  { %20 = dma.hbm_to_vmem [thread:$0]  %s627_s0, 512, %s18_s13, [#allocation3]  }
  0x13   :  { %s506_s28 = scalar_lea.hbm %s628_s1, 16384 }
  0x14   :  { %p507_p8 = scmp.ne.s32.totalorder %s628_s1, %s506_s28  ;;  %p510_p9 = scmp.lt.u32.totalorder %s506_s28, %s628_s1 }
  0x16   :  { %p512_p10 = pnand %p510_p9, %p507_p8 }
  0x18   :  { %515 = shalt.err (!%p512_p10)
}
  0x19   :  { %s516_s6 = scalar_lea.vmem %s581_s15, 16384  ;;  %p521_p12 = scmp.lt.s32.totalorder %s581_s15, %s581_s15 }
  0x1a   :  { %p517_p11 = scmp.ne.s32.totalorder %s581_s15, %s516_s6  ;;  %p522_p13 = scmp.lt.s32.totalorder %s516_s6, %s516_s6 }
  0x1c   :  { %p523_p0 = por %p522_p13, %p521_p12 }
  0x1e   :  { %p524_p1 = pnand %p523_p0, %p517_p11 }
  0x20   :  { %527 = shalt.err (!%p524_p1)
}
  0x21   :  { %s558_s0 = smov 256   ;;  %s559_s7 = smov 16  }
  0x22   :  { %32 = dma.hbm_to_vmem [thread:$0]  %s628_s1, 16384, %s581_s15, [#allocation6], %s558_s0, %s558_s0, %s559_s7  }
  0x23   :  { %550 = dma.done.wait [#allocation3], 512  }
  0x24   :  { %551 = vsyncadd [#allocation3], 4294966784 }
  0x25   :  { %552 = dma.done.wait [#allocation6], 16384  }
  0x26   :  { %553 = vsyncadd [#allocation6], 4294950912  ;;  %v46_v0 = vld [vmem:[#allocation5 + $0x8] sm:$0xff]  ;;  %v48_v1 = vld [vmem:[#allocation5 + $0x18] sm:$0xff]  ;;  %s560_s11 = smov [#allocation7]  }
  0x27   :  { %v45_v2 = vld [vmem:[#allocation5] sm:$0xff]  ;;  %v347_v3 = vpack.c.bf16 %v48_v1, %v46_v0  ;;  %v47_v4 = vld [vmem:[#allocation5 + $0x10] sm:$0xff]  ;;  %v110_v5 = vld [vmem:[#allocation5 + $0x208] sm:$0xff]  ;;  %s337_s12 = sshll.u32 %s560_s11, 4  ;;  %s338_s12 = int_to_ptr.vmem [resolvable:$true] %s337_s12 }
  0x28   :  { %v112_v6 = vld [vmem:[#allocation5 + $0x218] sm:$0xff]  ;;  %v349_v7 = vpack.c.bf16 %v47_v4, %v45_v2  ;;  %v109_v9 = vld [vmem:[#allocation5 + $0x200] sm:$0xff]  ;;  %v111_v10 = vld [vmem:[#allocation5 + $0x210] sm:$0xff]  ;;  %s528_s13 = scalar_lea.vmem %s338_s12, 256  ;;  %p533_p3 = scmp.lt.s32.totalorder %s338_s12, %s338_s12 }
  0x29   :  { %v411_v8 = vpack.c.bf16 %v112_v6, %v110_v5  ;;  %v50_v11 = vld [vmem:[#allocation5 + $0x28] sm:$0xff]  ;;  %348 = vmatprep.subr.bf16.mxu1 %v347_v3  ;;  %v413_v12 = vpack.c.bf16 %v111_v10, %v109_v9  ;;  %v52_v13 = vld [vmem:[#allocation5 + $0x38] sm:$0xff]  ;;  %v49_v14 = vld [vmem:[#allocation5 + $0x20] sm:$0xff]  ;;  %p529_p2 = scmp.ne.s32.totalorder %s338_s12, %s528_s13  ;;  %p534_p4 = scmp.lt.s32.totalorder %s528_s13, %s528_s13 }
  0x2a   :  { %v51_v15 = vld [vmem:[#allocation5 + $0x30] sm:$0xff]  ;;  %350 = vmatpush1.bf16.msra.mxu1 %v349_v7  ;;  %v351_v16 = vpack.c.bf16 %v52_v13, %v50_v11  ;;  %v114_v18 = vld [vmem:[#allocation5 + $0x228] sm:$0xff]  ;;  %v116_v19 = vld [vmem:[#allocation5 + $0x238] sm:$0xff] }
  0x2b   :  { %412 = vmatprep.subr.bf16.mxu0 %v411_v8  ;;  %v353_v17 = vpack.c.bf16 %v51_v15, %v49_v14  ;;  %v113_v20 = vld [vmem:[#allocation5 + $0x220] sm:$0xff]  ;;  %v415_v21 = vpack.c.bf16 %v116_v19, %v114_v18  ;;  %v115_v22 = vld [vmem:[#allocation5 + $0x230] sm:$0xff]  ;;  %v54_v23 = vld [vmem:[#allocation5 + $0x48] sm:$0xff]  ;;  %p535_p5 = por %p534_p4, %p533_p3 }
  0x2c   :  { %414 = vmatpush1.bf16.msra.mxu0 %v413_v12  ;;  %v56_v24 = vld [vmem:[#allocation5 + $0x58] sm:$0xff]  ;;  %352 = vmatprep.subr.bf16.mxu1 %v351_v16  ;;  %v417_v25 = vpack.c.bf16 %v115_v22, %v113_v20  ;;  %v53_v27 = vld [vmem:[#allocation5 + $0x40] sm:$0xff]  ;;  %v55_v28 = vld [vmem:[#allocation5 + $0x50] sm:$0xff] }
  0x2d   :  { %v355_v26 = vpack.c.bf16 %v56_v24, %v54_v23  ;;  %v118_v29 = vld [vmem:[#allocation5 + $0x248] sm:$0xff]  ;;  %416 = vmatprep.subr.bf16.mxu0 %v415_v21  ;;  %v120_v30 = vld [vmem:[#allocation5 + $0x258] sm:$0xff]  ;;  %v117_v31 = vld [vmem:[#allocation5 + $0x240] sm:$0xff]  ;;  %v357_v33 = vpack.c.bf16 %v55_v28, %v53_v27  ;;  %p536_p6 = pnand %p535_p5, %p529_p2 }
  0x2e   :  { %v119_v32 = vld [vmem:[#allocation5 + $0x250] sm:$0xff]  ;;  %354 = vmatpush1.bf16.msra.mxu1 %v353_v17  ;;  %v419_v34 = vpack.c.bf16 %v120_v30, %v118_v29  ;;  %v58_v35 = vld [vmem:[#allocation5 + $0x68] sm:$0xff]  ;;  %v60_v36 = vld [vmem:[#allocation5 + $0x78] sm:$0xff] }
  0x2f   :  { %v57_v37 = vld [vmem:[#allocation5 + $0x60] sm:$0xff]  ;;  %356 = vmatprep.subr.bf16.mxu1 %v355_v26  ;;  %v421_v38 = vpack.c.bf16 %v119_v32, %v117_v31  ;;  %v359_v39 = vpack.c.bf16 %v60_v36, %v58_v35  ;;  %v59_v40 = vld [vmem:[#allocation5 + $0x70] sm:$0xff]  ;;  %v122_v41 = vld [vmem:[#allocation5 + $0x268] sm:$0xff] }
  0x30   :  { %418 = vmatpush1.bf16.msra.mxu0 %v417_v25  ;;  %v124_v42 = vld [vmem:[#allocation5 + $0x278] sm:$0xff]  ;;  %v121_v44 = vld [vmem:[#allocation5 + $0x260] sm:$0xff]  ;;  %v123_v45 = vld [vmem:[#allocation5 + $0x270] sm:$0xff]  ;;  %v361_v48 = vpack.c.bf16 %v59_v40, %v57_v37 }
  0x31   :  { %420 = vmatprep.subr.bf16.mxu0 %v419_v34  ;;  %v423_v43 = vpack.c.bf16 %v124_v42, %v122_v41  ;;  %v62_v46 = vld [vmem:[#allocation5 + $0x88] sm:$0xff]  ;;  %v64_v47 = vld [vmem:[#allocation5 + $0x98] sm:$0xff]  ;;  %v425_v51 = vpack.c.bf16 %v123_v45, %v121_v44  ;;  %v61_v53 = vld [vmem:[#allocation5 + $0x80] sm:$0xff] }
  0x32   :  { %358 = vmatpush1.bf16.msra.mxu1 %v357_v33  ;;  %v126_v49 = vld [vmem:[#allocation5 + $0x288] sm:$0xff]  ;;  %v128_v50 = vld [vmem:[#allocation5 + $0x298] sm:$0xff]  ;;  %v363_v52 = vpack.c.bf16 %v64_v47, %v62_v46  ;;  %v63_v54 = vld [vmem:[#allocation5 + $0x90] sm:$0xff] }
  0x33   :  { %360 = vmatprep.subr.bf16.mxu1 %v359_v39  ;;  %v125_v55 = vld [vmem:[#allocation5 + $0x280] sm:$0xff]  ;;  %v427_v56 = vpack.c.bf16 %v128_v50, %v126_v49  ;;  %v127_v57 = vld [vmem:[#allocation5 + $0x290] sm:$0xff]  ;;  %v66_v58 = vld [vmem:[#allocation5 + $0xa8] sm:$0xff]  ;;  %v365_v62 = vpack.c.bf16 %v63_v54, %v61_v53 }
  0x34   :  { %422 = vmatpush1.bf16.msra.mxu0 %v421_v38  ;;  %v68_v59 = vld [vmem:[#allocation5 + $0xb8] sm:$0xff]  ;;  %v130_v60 = vld [vmem:[#allocation5 + $0x2a8] sm:$0xff]  ;;  %v429_v63 = vpack.c.bf16 %v127_v57, %v125_v55  ;;  %v65_v1 = vld [vmem:[#allocation5 + $0xa0] sm:$0xff] }
  0x35   :  { %424 = vmatprep.subr.bf16.mxu0 %v423_v43  ;;  %v132_v61 = vld [vmem:[#allocation5 + $0x2b8] sm:$0xff]  ;;  %v367_v0 = vpack.c.bf16 %v68_v59, %v66_v58  ;;  %v67_v2 = vld [vmem:[#allocation5 + $0xb0] sm:$0xff]  ;;  %v129_v3 = vld [vmem:[#allocation5 + $0x2a0] sm:$0xff] }
  0x36   :  { %362 = vmatpush1.bf16.msra.mxu1 %v361_v48  ;;  %v431_v4 = vpack.c.bf16 %v132_v61, %v130_v60  ;;  %v131_v5 = vld [vmem:[#allocation5 + $0x2b0] sm:$0xff]  ;;  %v70_v6 = vld [vmem:[#allocation5 + $0xc8] sm:$0xff]  ;;  %v72_v7 = vld [vmem:[#allocation5 + $0xd8] sm:$0xff]  ;;  %v369_v10 = vpack.c.bf16 %v67_v2, %v65_v1 }
  0x37   :  { %364 = vmatprep.subr.bf16.mxu1 %v363_v52  ;;  %v134_v8 = vld [vmem:[#allocation5 + $0x2c8] sm:$0xff]  ;;  %v136_v9 = vld [vmem:[#allocation5 + $0x2d8] sm:$0xff]  ;;  %v433_v11 = vpack.c.bf16 %v131_v5, %v129_v3  ;;  %v371_v12 = vpack.c.bf16 %v72_v7, %v70_v6  ;;  %v69_v13 = vld [vmem:[#allocation5 + $0xc0] sm:$0xff] }
  0x38   :  { %426 = vmatpush1.bf16.msra.mxu0 %v425_v51  ;;  %v71_v14 = vld [vmem:[#allocation5 + $0xd0] sm:$0xff]  ;;  %v133_v15 = vld [vmem:[#allocation5 + $0x2c0] sm:$0xff]  ;;  %v435_v16 = vpack.c.bf16 %v136_v9, %v134_v8  ;;  %v74_v18 = vld [vmem:[#allocation5 + $0xe8] sm:$0xff] }
  0x39   :  { %428 = vmatprep.subr.bf16.mxu0 %v427_v56  ;;  %v135_v17 = vld [vmem:[#allocation5 + $0x2d0] sm:$0xff]  ;;  %v76_v19 = vld [vmem:[#allocation5 + $0xf8] sm:$0xff]  ;;  %v138_v20 = vld [vmem:[#allocation5 + $0x2e8] sm:$0xff]  ;;  %v373_v22 = vpack.c.bf16 %v71_v14, %v69_v13 }
  0x3a   :  { %366 = vmatpush1.bf16.msra.mxu1 %v365_v62  ;;  %v140_v21 = vld [vmem:[#allocation5 + $0x2f8] sm:$0xff]  ;;  %v437_v23 = vpack.c.bf16 %v135_v17, %v133_v15  ;;  %v375_v24 = vpack.c.bf16 %v76_v19, %v74_v18  ;;  %v73_v25 = vld [vmem:[#allocation5 + $0xe0] sm:$0xff]  ;;  %v75_v26 = vld [vmem:[#allocation5 + $0xf0] sm:$0xff] }
  0x3b   :  { %368 = vmatprep.subr.bf16.mxu1 %v367_v0  ;;  %v137_v27 = vld [vmem:[#allocation5 + $0x2e0] sm:$0xff]  ;;  %v439_v28 = vpack.c.bf16 %v140_v21, %v138_v20  ;;  %v139_v29 = vld [vmem:[#allocation5 + $0x2f0] sm:$0xff]  ;;  %v78_v30 = vld [vmem:[#allocation5 + $0x108] sm:$0xff]  ;;  %v377_v34 = vpack.c.bf16 %v75_v26, %v73_v25 }
  0x3c   :  { %430 = vmatpush1.bf16.msra.mxu0 %v429_v63  ;;  %v80_v31 = vld [vmem:[#allocation5 + $0x118] sm:$0xff]  ;;  %v142_v32 = vld [vmem:[#allocation5 + $0x308] sm:$0xff]  ;;  %v441_v35 = vpack.c.bf16 %v139_v29, %v137_v27  ;;  %v77_v37 = vld [vmem:[#allocation5 + $0x100] sm:$0xff] }
  0x3d   :  { %432 = vmatprep.subr.bf16.mxu0 %v431_v4  ;;  %v144_v33 = vld [vmem:[#allocation5 + $0x318] sm:$0xff]  ;;  %v379_v36 = vpack.c.bf16 %v80_v31, %v78_v30  ;;  %v79_v38 = vld [vmem:[#allocation5 + $0x110] sm:$0xff]  ;;  %v141_v39 = vld [vmem:[#allocation5 + $0x300] sm:$0xff] }
  0x3e   :  { %370 = vmatpush1.bf16.msra.mxu1 %v369_v10  ;;  %v443_v40 = vpack.c.bf16 %v144_v33, %v142_v32  ;;  %v143_v41 = vld [vmem:[#allocation5 + $0x310] sm:$0xff]  ;;  %v82_v42 = vld [vmem:[#allocation5 + $0x128] sm:$0xff]  ;;  %v84_v43 = vld [vmem:[#allocation5 + $0x138] sm:$0xff]  ;;  %v381_v46 = vpack.c.bf16 %v79_v38, %v77_v37 }
  0x3f   :  { %372 = vmatprep.subr.bf16.mxu1 %v371_v12  ;;  %v146_v44 = vld [vmem:[#allocation5 + $0x328] sm:$0xff]  ;;  %v148_v45 = vld [vmem:[#allocation5 + $0x338] sm:$0xff]  ;;  %v445_v47 = vpack.c.bf16 %v143_v41, %v141_v39  ;;  %v383_v48 = vpack.c.bf16 %v84_v43, %v82_v42  ;;  %v81_v49 = vld [vmem:[#allocation5 + $0x120] sm:$0xff] }
  0x40   :  { %434 = vmatpush1.bf16.msra.mxu0 %v433_v11  ;;  %v83_v50 = vld [vmem:[#allocation5 + $0x130] sm:$0xff]  ;;  %v145_v51 = vld [vmem:[#allocation5 + $0x320] sm:$0xff]  ;;  %v447_v52 = vpack.c.bf16 %v148_v45, %v146_v44  ;;  %v86_v54 = vld [vmem:[#allocation5 + $0x148] sm:$0xff] }
  0x41   :  { %436 = vmatprep.subr.bf16.mxu0 %v435_v16  ;;  %v147_v53 = vld [vmem:[#allocation5 + $0x330] sm:$0xff]  ;;  %v88_v55 = vld [vmem:[#allocation5 + $0x158] sm:$0xff]  ;;  %v150_v56 = vld [vmem:[#allocation5 + $0x348] sm:$0xff]  ;;  %v385_v58 = vpack.c.bf16 %v83_v50, %v81_v49 }
  0x42   :  { %374 = vmatpush1.bf16.msra.mxu1 %v373_v22  ;;  %v152_v57 = vld [vmem:[#allocation5 + $0x358] sm:$0xff]  ;;  %v449_v59 = vpack.c.bf16 %v147_v53, %v145_v51  ;;  %v387_v60 = vpack.c.bf16 %v88_v55, %v86_v54  ;;  %v85_v61 = vld [vmem:[#allocation5 + $0x140] sm:$0xff]  ;;  %v87_v62 = vld [vmem:[#allocation5 + $0x150] sm:$0xff] }
  0x43   :  { %376 = vmatprep.subr.bf16.mxu1 %v375_v24  ;;  %v149_v63 = vld [vmem:[#allocation5 + $0x340] sm:$0xff]  ;;  %v451_v0 = vpack.c.bf16 %v152_v57, %v150_v56  ;;  %v151_v1 = vld [vmem:[#allocation5 + $0x350] sm:$0xff]  ;;  %v90_v2 = vld [vmem:[#allocation5 + $0x168] sm:$0xff]  ;;  %v389_v6 = vpack.c.bf16 %v87_v62, %v85_v61 }
  0x44   :  { %438 = vmatpush1.bf16.msra.mxu0 %v437_v23  ;;  %v92_v3 = vld [vmem:[#allocation5 + $0x178] sm:$0xff]  ;;  %v154_v4 = vld [vmem:[#allocation5 + $0x368] sm:$0xff]  ;;  %v89_v7 = vld [vmem:[#allocation5 + $0x160] sm:$0xff]  ;;  %v453_v8 = vpack.c.bf16 %v151_v1, %v149_v63 }
  0x45   :  { %440 = vmatprep.subr.bf16.mxu0 %v439_v28  ;;  %v156_v5 = vld [vmem:[#allocation5 + $0x378] sm:$0xff]  ;;  %v391_v9 = vpack.c.bf16 %v92_v3, %v90_v2  ;;  %v91_v10 = vld [vmem:[#allocation5 + $0x170] sm:$0xff]  ;;  %v153_v11 = vld [vmem:[#allocation5 + $0x360] sm:$0xff] }
  0x46   :  { %378 = vmatpush1.bf16.msra.mxu1 %v377_v34  ;;  %v155_v12 = vld [vmem:[#allocation5 + $0x370] sm:$0xff]  ;;  %v455_v13 = vpack.c.bf16 %v156_v5, %v154_v4  ;;  %v94_v14 = vld [vmem:[#allocation5 + $0x188] sm:$0xff]  ;;  %v96_v15 = vld [vmem:[#allocation5 + $0x198] sm:$0xff]  ;;  %v393_v20 = vpack.c.bf16 %v91_v10, %v89_v7  ;;  %v175_v4 = vlaneseq }
  0x47   :  { %380 = vmatprep.subr.bf16.mxu1 %v379_v36  ;;  %v42_v16 = vld [vmem:[#allocation2 + $0x8] sm:$0xff]  ;;  %v160_v18 = vld [vmem:[#allocation5 + $0x398] sm:$0xff]  ;;  %v457_v21 = vpack.c.bf16 %v155_v12, %v153_v11  ;;  %v395_v22 = vpack.c.bf16 %v96_v15, %v94_v14  ;;  %v93_v23 = vld [vmem:[#allocation5 + $0x180] sm:$0xff] }
  0x48   :  { %442 = vmatpush1.bf16.msra.mxu0 %v441_v35  ;;  %v158_v17 = vld [vmem:[#allocation5 + $0x388] sm:$0xff]  ;;  %249 = vmatprep.mubr.f32.mxu1 %v42_v16  ;;  %v44_v19 = vld [vmem:[#allocation2 + $0x18] sm:$0xff]  ;;  %v95_v24 = vld [vmem:[#allocation5 + $0x190] sm:$0xff]  ;;  %v176_v5 = vshrl.u32 %v175_v4, 7 }
  0x49   :  { %444 = vmatprep.subr.bf16.mxu0 %v443_v40  ;;  %320 = vmatprep.mubr.f32.mxu0 %v44_v19  ;;  %v157_v25 = vld [vmem:[#allocation5 + $0x380] sm:$0xff]  ;;  %v459_v26 = vpack.c.bf16 %v160_v18, %v158_v17  ;;  %v159_v27 = vld [vmem:[#allocation5 + $0x390] sm:$0xff]  ;;  %v98_v28 = vld [vmem:[#allocation5 + $0x1a8] sm:$0xff]  ;;  %v397_v32 = vpack.c.bf16 %v95_v24, %v93_v23 }
  0x4a   :  { %382 = vmatpush1.bf16.msra.mxu1 %v381_v46  ;;  %v100_v29 = vld [vmem:[#allocation5 + $0x1b8] sm:$0xff]  ;;  %v162_v30 = vld [vmem:[#allocation5 + $0x3a8] sm:$0xff]  ;;  %v461_v33 = vpack.c.bf16 %v159_v27, %v157_v25  ;;  %v97_v35 = vld [vmem:[#allocation5 + $0x1a0] sm:$0xff] }
  0x4b   :  { %384 = vmatprep.subr.bf16.mxu1 %v383_v48  ;;  %v164_v31 = vld [vmem:[#allocation5 + $0x3b8] sm:$0xff]  ;;  %v399_v34 = vpack.c.bf16 %v100_v29, %v98_v28  ;;  %v99_v36 = vld [vmem:[#allocation5 + $0x1b0] sm:$0xff]  ;;  %v161_v37 = vld [vmem:[#allocation5 + $0x3a0] sm:$0xff] }
  0x4c   :  { %446 = vmatpush1.bf16.msra.mxu0 %v445_v47  ;;  %v463_v38 = vpack.c.bf16 %v164_v31, %v162_v30  ;;  %v163_v39 = vld [vmem:[#allocation5 + $0x3b0] sm:$0xff]  ;;  %v102_v40 = vld [vmem:[#allocation5 + $0x1c8] sm:$0xff]  ;;  %v104_v41 = vld [vmem:[#allocation5 + $0x1d8] sm:$0xff]  ;;  %v401_v44 = vpack.c.bf16 %v99_v36, %v97_v35 }
  0x4d   :  { %448 = vmatprep.subr.bf16.mxu0 %v447_v52  ;;  %v166_v42 = vld [vmem:[#allocation5 + $0x3c8] sm:$0xff]  ;;  %v168_v43 = vld [vmem:[#allocation5 + $0x3d8] sm:$0xff]  ;;  %v465_v45 = vpack.c.bf16 %v163_v39, %v161_v37  ;;  %v403_v46 = vpack.c.bf16 %v104_v41, %v102_v40  ;;  %v101_v47 = vld [vmem:[#allocation5 + $0x1c0] sm:$0xff] }
  0x4e   :  { %386 = vmatpush1.bf16.msra.mxu1 %v385_v58  ;;  %v103_v48 = vld [vmem:[#allocation5 + $0x1d0] sm:$0xff]  ;;  %v165_v49 = vld [vmem:[#allocation5 + $0x3c0] sm:$0xff]  ;;  %v467_v50 = vpack.c.bf16 %v168_v43, %v166_v42  ;;  %v106_v52 = vld [vmem:[#allocation5 + $0x1e8] sm:$0xff] }
  0x4f   :  { %388 = vmatprep.subr.bf16.mxu1 %v387_v60  ;;  %v167_v51 = vld [vmem:[#allocation5 + $0x3d0] sm:$0xff]  ;;  %v108_v53 = vld [vmem:[#allocation5 + $0x1f8] sm:$0xff]  ;;  %v170_v54 = vld [vmem:[#allocation5 + $0x3e8] sm:$0xff]  ;;  %v405_v56 = vpack.c.bf16 %v103_v48, %v101_v47 }
  0x50   :  { %450 = vmatpush1.bf16.msra.mxu0 %v449_v59  ;;  %v172_v55 = vld [vmem:[#allocation5 + $0x3f8] sm:$0xff]  ;;  %v469_v57 = vpack.c.bf16 %v167_v51, %v165_v49  ;;  %v407_v58 = vpack.c.bf16 %v108_v53, %v106_v52  ;;  %v105_v59 = vld [vmem:[#allocation5 + $0x1e0] sm:$0xff]  ;;  %v107_v60 = vld [vmem:[#allocation5 + $0x1f0] sm:$0xff] }
  0x51   :  { %452 = vmatprep.subr.bf16.mxu0 %v451_v0  ;;  %v471_v61 = vpack.c.bf16 %v172_v55, %v170_v54  ;;  %v169_v62 = vld [vmem:[#allocation5 + $0x3e0] sm:$0xff]  ;;  %v171_v63 = vld [vmem:[#allocation5 + $0x3f0] sm:$0xff]  ;;  %v409_v0 = vpack.c.bf16 %v107_v60, %v105_v59 }
  0x52   :  { %390 = vmatpush1.bf16.msra.mxu1 %v389_v6  ;;  %v473_v1 = vpack.c.bf16 %v171_v63, %v169_v62  ;;  %v41_v2 = vld [vmem:[#allocation2] sm:$0xff]  ;;  %v43_v3 = vld [vmem:[#allocation2 + $0x10] sm:$0xff]  ;;  %v177_v6 = vsub.s32 0, %v176_v5 }
  0x53   :  { %392 = vmatprep.subr.bf16.mxu1 %v391_v9  ;;  %v173_v7 = vld [vmem:[%s629_s2] sm:$0x3] }
  0x54   :  { %454 = vmatpush1.bf16.msra.mxu0 %v453_v8  ;;  %v181_v8 = vsub.s32 1, %v176_v5  ;;  %v178_v9 = vrot.slane %v173_v7, %v177_v6 }
  0x55   :  { %456 = vmatprep.subr.bf16.mxu0 %v455_v13 }
  0x56   :  { %394 = vmatpush1.bf16.msra.mxu1 %v393_v20  ;;  %v182_v10 = vrot.slane %v173_v7, %v181_v8 }
  0x57   :  { %396 = vmatprep.subr.bf16.mxu1 %v395_v22 }
  0x58   :  { %458 = vmatpush1.bf16.msra.mxu0 %v457_v21 }
  0x59   :  { %460 = vmatprep.subr.bf16.mxu0 %v459_v26 }
  0x5a   :  { %398 = vmatpush1.bf16.msra.mxu1 %v397_v32 }
  0x5b   :  { %400 = vmatprep.subr.bf16.mxu1 %v399_v34 }
  0x5c   :  { %462 = vmatpush1.bf16.msra.mxu0 %v461_v33 }
  0x5d   :  { %464 = vmatprep.subr.bf16.mxu0 %v463_v38 }
  0x5e   :  { %402 = vmatpush1.bf16.msra.mxu1 %v401_v44 }
  0x5f   :  { %404 = vmatprep.subr.bf16.mxu1 %v403_v46 }
  0x60   :  { %466 = vmatpush1.bf16.msra.mxu0 %v465_v45 }
  0x61   :  { %468 = vmatprep.subr.bf16.mxu0 %v467_v50 }
  0x62   :  { %406 = vmatpush1.bf16.msra.mxu1 %v405_v56 }
  0x63   :  { %408 = vmatprep.subr.bf16.mxu1 %v407_v58 }
  0x64   :  { %470 = vmatpush1.bf16.msra.mxu0 %v469_v57 }
  0x65   :  { %472 = vmatprep.subr.bf16.mxu0 %v471_v61 }
  0x66   :  { %410 = vmatpush1.bf16.msra.mxu1 %v409_v0 }
  0x68   :  { %474 = vmatpush1.bf16.msra.mxu0 %v473_v1 }
  0x69   :  { %250 = vmatmul.mubr.f32.vlgmr.msra.gmra.mrb[0].mxu1 %v41_v2 }
  0x6b   :  { %321 = vmatmul.mubr.f32.vlgmr.msra.gmra.mrb[0].mxu0 %v43_v3 }
 0x13c   :  { %v251_v11 = vpop.f32.mrb[0].mxu1 }
 0x13d   :  { %v252_v12 = vadd.f32 %v251_v11, %v178_v9  ;;  %v253_v13 = vpop.f32.mrb[1].mxu1 }
 0x13e   :  { %v322_v14 = vpop.f32.mrb[0].mxu0  ;;  %v254_v15 = vadd.f32 %v253_v13, %v182_v10 }
 0x13f   :  { %v324_v16 = vpop.f32.mrb[1].mxu0  ;;  %v323_v17 = vadd.f32 %v322_v14, %v252_v12 }
 0x140   :  { %v325_v18 = vadd.f32 %v324_v16, %v254_v15 }
 0x141   :  { %v327_v19 = vmax.f32 %v323_v17, 0.0 }
 0x142   :  { %v328_v20 = vmax.f32 %v325_v18, 0.0 }
 0x143   :  { %329 = vst [vmem:[#allocation7] sm:$0xff] %v327_v19 }
 0x144   :  { %330 = vst [vmem:[#allocation7 + $0x8] sm:$0xff] %v328_v20 }
 0x145   :  { %539 = shalt.err (!%p536_p6)
}
 0x146   :  { %s540_s15 = scalar_lea.hbm %s630_s3, 256 }
 0x147   :  { %p541_p7 = scmp.ne.s32.totalorder %s630_s3, %s540_s15  ;;  %p544_p8 = scmp.lt.u32.totalorder %s540_s15, %s630_s3 }
 0x149   :  { %p546_p9 = pnand %p544_p8, %p541_p7 }
 0x14b   :  { %549 = shalt.err (!%p546_p9)
}
 0x14c   :  { %340 = dma.vmem_to_hbm [thread:$0]  %s338_s12, 256, %s630_s3, [#allocation4]  }
 0x14d   :  { %554 = dma.done.wait [#allocation4], 256  }
 0x14e   :  { %555 = vsyncadd [#allocation4], 4294967040 }
 0x14f   :  { %344 = vsyncpa [#allocation3], 1 }
 0x150   :  { %345 = vsyncpa [#allocation6], 1 }
 0x151   :  { %346 = vsyncpa [#allocation4], 1 }

</bundles_post_ra>
